<compile_context>
chip_gen: v7x
topology: tpu7x:2x2x1
jax: 0.10.0
libtpu: 0.0.40
codegen_flags: <defaults>
</compile_context>

<pallas_src>
import functools
import math

import numpy as np
import jax
import jax.numpy as jnp
from jax.experimental import pallas as pl
from jax.experimental.pallas import tpu as pltpu


# ----------------- host-side construction of the linear resample operators -----------------

def _sinc(x):
    return np.where(x != 0, np.sin(np.pi * x) / (np.pi * x), 1.0)


def _lanczos(x, a):
    cond = np.logical_and(-a < x, x < a)
    out = np.where(cond, _sinc(x) * _sinc(x / a), 0.0)
    return out / out.sum()


def _ramp(ratio, width):
    n = math.ceil(width / ratio + 1)
    out = np.empty(n, dtype=np.float64)
    cur = 0.0
    for i in range(n):
        out[i] = cur
        cur += ratio
    return np.concatenate([-out[1:][::-1], out])[1:-1]


def _reflect_index(idx, size):
    # PyTorch 'reflect' padding (no edge repeat)
    if idx < 0:
        return -idx
    if idx >= size:
        return 2 * (size - 1) - idx
    return idx


def _lanczos_conv_matrix(size, ratio):
    """(size, size) matrix equivalent to reflect-pad + 1-D conv with lanczos(ramp(ratio,2),2)."""
    k = _lanczos(_ramp(ratio, 2), 2)
    K = k.shape[0]
    pad = (K - 1) // 2
    A = np.zeros((size, size), dtype=np.float64)
    for i in range(size):
        for kk in range(K):
            src = _reflect_index(i + kk - pad, size)
            A[i, src] += k[kk]
    return A


def _cubic1(x, a):
    return ((a + 2.0) * x - (a + 3.0)) * x * x + 1.0


def _cubic2(x, a):
    return ((a * x - 5.0 * a) * x + 8.0 * a) * x - 4.0 * a


def _bicubic_matrix(out_size, in_size):
    """(out_size, in_size) 1-D bicubic interpolation matrix, PyTorch semantics
    (A = -0.75, align_corners=True, clamped border indices)."""
    A = -0.75
    B = np.zeros((out_size, in_size), dtype=np.float64)
    for i in range(out_size):
        x = i * (in_size - 1) / (out_size - 1) if out_size > 1 else 0.0
        x0 = int(np.floor(x))
        t = x - x0
        coeffs = (_cubic2(t + 1.0, A), _cubic1(t, A),
                  _cubic1(1.0 - t, A), _cubic2(2.0 - t, A))
        for kk in range(4):
            src = min(max(x0 - 1 + kk, 0), in_size - 1)
            B[i, src] += coeffs[kk]
    return B


def resample_matrices(h, w, dh, dw):
    """Collapse (optional Lanczos anti-alias conv) + bicubic into Mh (dh,h) and Mw (dw,w)."""
    Mh = _bicubic_matrix(dh, h)
    Mw = _bicubic_matrix(dw, w)
    if dh < h:
        Mh = Mh @ _lanczos_conv_matrix(h, dh / h)
    if dw < w:
        Mw = Mw @ _lanczos_conv_matrix(w, dw / w)
    return Mh.astype(np.float32), Mw.astype(np.float32)


def _round_up(x, m):
    return (x + m - 1) // m * m


@functools.lru_cache(maxsize=None)
def _resample_operators(h, w, dh, dw):
    """Cached bf16 operators, zero-padded for TPU layout:
         Mh   : (dhp, h)  -- rows >= dh are zero (dhp = round_up(dh, 8))
         Mw^T : (w, dwp)  -- cols >= dw are zero (dwp = round_up(dw, 128))
    Padded output rows/cols are exactly zero and are sliced off in the wrapper.
    """
    mh, mw = resample_matrices(h, w, dh, dw)
    dhp = _round_up(dh, 8)
    dwp = _round_up(dw, 128)
    mh_p = np.zeros((dhp, h), dtype=np.float32)
    mh_p[:dh, :] = mh
    mwt_p = np.zeros((w, dwp), dtype=np.float32)
    mwt_p[:, :dw] = mw.T
    return (jnp.asarray(mh_p, dtype=jnp.bfloat16),
            jnp.asarray(mwt_p, dtype=jnp.bfloat16),
            dhp, dwp)


# ----------------- generation-aware sizing helpers -----------------

def _vmem_capacity_bytes():
    try:
        cap = int(pltpu.get_tpu_info().vmem_capacity_bytes)
        if cap > 0:
            return cap
    except Exception:
        pass
    return 64 * 1024 * 1024   # conservative: v7x per-TensorCore VMEM


def _num_tensorcores():
    try:
        kind = jax.devices()[0].device_kind.lower()
    except Exception:
        return 1
    return 2 if ("v7" in kind or "7x" in kind) else 1


def _choose_block_images(nc, h, w, dhp, dwp, vmem_cap, cores):
    """Images per grid step.

    Big enough to amortize the ~0.35us/step grid overhead and build a tall
    (B*h, w) x (w, dwp) MXU matmul; small enough that the double-buffered
    blocks + in-kernel intermediates fit this generation's VMEM.  On dual
    TensorCore chips (v7x) keep >= 2 pipelined steps per core so input DMA
    overlaps compute; single-core chips (v5e/v6e) are not split for its own sake.
    """
    per_img = (2 * h * w * 4          # double-buffered f32 input block
               + 2 * dhp * dwp * 4    # double-buffered output block
               + h * w * 2            # bf16 copy of the input block
               + h * dwp * 4          # f32 step-1 result
               + h * dwp * 2          # bf16 repacked scratch
               + dhp * dwp * 4)       # f32 step-2 result
    budget = vmem_cap // 2
    b = max(1, budget // max(per_img, 1))
    b = min(b, 64, nc)                # 64: keeps the unrolled repack loops small
    if cores >= 2:
        min_steps = 2 * cores         # >= 2 pipelined steps per TensorCore
        if nc >= min_steps:
            b = min(b, max(1, nc // min_steps))
    return int(b)


# ----------------- Pallas kernel: per grid step, B images  out = Mh @ X @ Mw^T -----------------

def _resample_kernel(x_ref, mh_ref, mwt_ref, o_ref, tt_ref):
    # x_ref  : (B, h, w)       f32  (bf16 cast folded into the kernel)
    # mh_ref : (dhp, h)        bf16
    # mwt_ref: (w, dwp)        bf16  (Mw pre-transposed + zero-padded on host)
    # o_ref  : (B, dhp, dwp)   output dtype
    # tt_ref : (h, B*dwp)      bf16 VMEM scratch
    B, h, w = x_ref.shape
    dwp = mwt_ref.shape[1]

    # Step 1: contract W for all B images in ONE MXU matmul: (B*h, w) @ (w, dwp).
    x2 = x_ref[...].reshape(B * h, w).astype(jnp.bfloat16)
    t = jnp.dot(x2, mwt_ref[...], preferred_element_type=jnp.float32)   # (B*h, dwp) f32

    # Repack (B, h, dwp) -> (h, B*dwp) with static, lane-aligned slice copies so
    # step 2 is a single wide matmul (Mh staged into the MXU once, full lane fill).
    for b in range(B):
        tt_ref[:, b * dwp:(b + 1) * dwp] = (
            t[b * h:(b + 1) * h, :].astype(jnp.bfloat16))

    # Step 2: contract H for all B images in ONE MXU matmul: (dhp, h) @ (h, B*dwp).
    o2 = jnp.dot(mh_ref[...], tt_ref[...], preferred_element_type=jnp.float32)

    # Unpack (dhp, B*dwp) -> (B, dhp, dwp) output block (static slices, full-lane stores).
    for b in range(B):
        o_ref[b] = o2[:, b * dwp:(b + 1) * dwp].astype(o_ref.dtype)


def pallas_resample(x_nchw, cut_size, out_dtype=jnp.float32):
    n, c, h, w = x_nchw.shape
    dh = dw = int(cut_size)
    mh, mwt, dhp, dwp = _resample_operators(h, w, dh, dw)

    nc = n * c
    vmem_cap = _vmem_capacity_bytes()
    cores = _num_tensorcores()
    B = _choose_block_images(nc, h, w, dhp, dwp, vmem_cap, cores)
    grid_len = pl.cdiv(nc, B)         # partial edge block is fine (garbage lanes dropped)

    # Free leading-dim merge; stays f32 -- the bf16 cast happens in-kernel so the
    # input is read from HBM exactly once.
    x_flat = x_nchw.reshape(nc, h, w)

    out_itemsize = np.dtype(out_dtype).itemsize
    flops = 2 * nc * (h * w * dwp + dhp * h * dwp)
    bytes_accessed = (nc * h * w * np.dtype(x_nchw.dtype).itemsize
                      + nc * dhp * dwp * out_itemsize
                      + (dhp * h + w * dwp) * 2)

    out = pl.pallas_call(
        _resample_kernel,
        out_shape=jax.ShapeDtypeStruct((nc, dhp, dwp), out_dtype),
        grid=(grid_len,),
        in_specs=[
            pl.BlockSpec((B, h, w), lambda g: (g, 0, 0)),
            pl.BlockSpec((dhp, h), lambda g: (0, 0)),
            pl.BlockSpec((w, dwp), lambda g: (0, 0)),
        ],
        out_specs=pl.BlockSpec((B, dhp, dwp), lambda g: (g, 0, 0)),
        scratch_shapes=[pltpu.VMEM((h, B * dwp), jnp.bfloat16)],
        compiler_params=pltpu.CompilerParams(
            dimension_semantics=("parallel",),
            vmem_limit_bytes=int(vmem_cap * 3 // 4),
        ),
        cost_estimate=pl.CostEstimate(
            flops=int(flops), transcendentals=0,
            bytes_accessed=int(bytes_accessed)),
    )(x_flat, mh, mwt)

    if dhp != dh or dwp != dw:
        out = out[:, :dh, :dw]        # drop zero padding (fuses with the consumer)
    return out.reshape(n, c, dh, dw)


# ----------------- jitted forward -----------------

@functools.partial(jax.jit, static_argnames=("cut_size", "out_dtype"))
def _augment_forward(x, key, cut_size, out_dtype=jnp.float32):
    n, c, sideY, sideX = x.shape
    # Reference: max_size == min_size == min(H, W), so the uniform `size` draw is
    # dead code; the cutout side is always size = min(H, W), and the offset along
    # the smaller dimension is always 0.  Specialize on the static shape so that
    # square inputs skip the cutout copy entirely.
    size = min(sideX, sideY)
    _, k_offx, k_offy = jax.random.split(key, 3)
    zero = jnp.int32(0)
    if sideX == sideY:
        cutout = x                                   # whole image, no HBM copy
    elif sideX > sideY:                              # size == sideY -> offsety == 0
        offsetx = jax.random.randint(k_offx, (), 0, sideX - size + 1).astype(jnp.int32)
        cutout = jax.lax.dynamic_slice(x, (zero, zero, zero, offsetx), (n, c, size, size))
    else:                                            # size == sideX -> offsetx == 0
        offsety = jax.random.randint(k_offy, (), 0, sideY - size + 1).astype(jnp.int32)
        cutout = jax.lax.dynamic_slice(x, (zero, zero, offsety, zero), (n, c, size, size))
    # TODO(synk): for non-square inputs the remaining single-axis dynamic_slice could
    # also be folded into the kernel (scalar-prefetch offset + manual DMA) to save
    # one more HBM pass.
    return pallas_resample(cutout, cut_size, out_dtype=out_dtype)


class Augmentions:
    """JAX/Pallas port of the PyTorch Augmentions module."""

    def __init__(self, cut_size, out_dtype=jnp.float32):
        self.cut_size = int(cut_size)
        self.out_dtype = out_dtype     # set to jnp.bfloat16 if the consumer casts anyway
        self.noise_fac = 0.1           # unused in forward (matches reference)

    def __call__(self, x, key):
        # TODO(synk): the Kornia stochastic augmentations (RandomHorizontalFlip,
        # RandomSolarize, RandomSharpness, RandomAffine, RandomPerspective,
        # ColorJitter) have no clean Pallas equivalent; each is applied with
        # probability p < 1, so the identity pass-through here is a valid
        # realization of the stochastic forward.
        return _augment_forward(x, key, cut_size=self.cut_size, out_dtype=self.out_dtype)


if __name__ == "__main__":
    key = jax.random.PRNGKey(0)
    kx, kaug = jax.random.split(key)
    # NCHW input, square so the random cutout covers the whole image
    x = jax.random.uniform(kx, (2, 4, 16, 16), dtype=jnp.float32)
    aug = Augmentions(cut_size=8)
    out = aug(x, kaug)
    jax.block_until_ready(out)
    assert out.shape == (2, 4, 8, 8), out.shape
    assert out.dtype == jnp.float32
    assert bool(jnp.all(jnp.isfinite(out)))
    print("KERNEL_OK")
</pallas_src>

<mosaic_0001>
module attributes {stable_mosaic.version = 11 : i64} {
  func.func @_resample_kernel(%arg0: i32, %arg1: memref<8x16x16xf32, #tpu.memory_space<vmem>>, %arg2: memref<8x16xbf16, #tpu.memory_space<vmem>>, %arg3: memref<16x128xbf16, #tpu.memory_space<vmem>>, %arg4: memref<8x8x128xf32, #tpu.memory_space<vmem>>, %arg5: memref<16x1024xbf16, #tpu.memory_space<vmem>>) attributes {dimension_semantics = [#tpu.dimension_semantics<parallel>], iteration_bounds = array<i64: 1>, scalar_prefetch = 0 : i64, scratch_operands = 1 : i64, tpu.core_type = #tpu.core_type<tc>, window_params = [{transform_indices = @transform_0, window_bounds = array<i64: 8, 16, 16>}, {pipeline_mode = #tpu.pipeline_mode<synchronous>, transform_indices = @transform_1, window_bounds = array<i64: 8, 16>}, {pipeline_mode = #tpu.pipeline_mode<synchronous>, transform_indices = @transform_2, window_bounds = array<i64: 16, 128>}, {transform_indices = @transform_3, window_bounds = array<i64: 8, 8, 128>}]} {
    %c0 = arith.constant 0 : index
    %c0_0 = arith.constant 0 : index
    %c0_1 = arith.constant 0 : index
    %0 = vector.load %arg1[%c0, %c0_0, %c0_1] : memref<8x16x16xf32, #tpu.memory_space<vmem>>, vector<8x16x16xf32>
    %1 = vector.shape_cast %0 : vector<8x16x16xf32> to vector<128x16xf32>
    %2 = arith.truncf %1 : vector<128x16xf32> to vector<128x16xbf16>
    %c0_2 = arith.constant 0 : index
    %c0_3 = arith.constant 0 : index
    %3 = vector.load %arg3[%c0_2, %c0_3] : memref<16x128xbf16, #tpu.memory_space<vmem>>, vector<16x128xbf16>
    %cst = arith.constant dense<0.000000e+00> : vector<128x128xf32>
    %4 = tpu.matmul %2, %3, %cst {dimension_numbers = #tpu.dot_dimension_numbers<[1], [0], [0], [1], [0, 0, 1, 1], [], []>} : vector<128x16xbf16>, vector<16x128xbf16>, vector<128x128xf32> -> vector<128x128xf32>
    %5 = vector.extract_strided_slice %4 {offsets = [0, 0], sizes = [16, 128], strides = [1, 1]} : vector<128x128xf32> to vector<16x128xf32>
    %6 = arith.truncf %5 : vector<16x128xf32> to vector<16x128xbf16>
    %c0_4 = arith.constant 0 : index
    %c0_5 = arith.constant 0 : index
    %7 = vector.load %arg5[%c0_4, %c0_5] : memref<16x1024xbf16, #tpu.memory_space<vmem>>, vector<16x128xbf16>
    tpu.vector_store %arg5[%c0_4, %c0_5], %6 {strides = array<i32>} : memref<16x1024xbf16, #tpu.memory_space<vmem>>, vector<16x128xbf16>,
    %8 = vector.extract_strided_slice %4 {offsets = [16, 0], sizes = [16, 128], strides = [1, 1]} : vector<128x128xf32> to vector<16x128xf32>
    %9 = arith.truncf %8 : vector<16x128xf32> to vector<16x128xbf16>
    %c0_6 = arith.constant 0 : index
    %c128 = arith.constant 128 : index
    %10 = vector.load %arg5[%c0_6, %c128] : memref<16x1024xbf16, #tpu.memory_space<vmem>>, vector<16x128xbf16>
    tpu.vector_store %arg5[%c0_6, %c128], %9 {strides = array<i32>} : memref<16x1024xbf16, #tpu.memory_space<vmem>>, vector<16x128xbf16>,
    %11 = vector.extract_strided_slice %4 {offsets = [32, 0], sizes = [16, 128], strides = [1, 1]} : vector<128x128xf32> to vector<16x128xf32>
    %12 = arith.truncf %11 : vector<16x128xf32> to vector<16x128xbf16>
    %c0_7 = arith.constant 0 : index
    %c256 = arith.constant 256 : index
    %13 = vector.load %arg5[%c0_7, %c256] : memref<16x1024xbf16, #tpu.memory_space<vmem>>, vector<16x128xbf16>
    tpu.vector_store %arg5[%c0_7, %c256], %12 {strides = array<i32>} : memref<16x1024xbf16, #tpu.memory_space<vmem>>, vector<16x128xbf16>,
    %14 = vector.extract_strided_slice %4 {offsets = [48, 0], sizes = [16, 128], strides = [1, 1]} : vector<128x128xf32> to vector<16x128xf32>
    %15 = arith.truncf %14 : vector<16x128xf32> to vector<16x128xbf16>
    %c0_8 = arith.constant 0 : index
    %c384 = arith.constant 384 : index
    %16 = vector.load %arg5[%c0_8, %c384] : memref<16x1024xbf16, #tpu.memory_space<vmem>>, vector<16x128xbf16>
    tpu.vector_store %arg5[%c0_8, %c384], %15 {strides = array<i32>} : memref<16x1024xbf16, #tpu.memory_space<vmem>>, vector<16x128xbf16>,
    %17 = vector.extract_strided_slice %4 {offsets = [64, 0], sizes = [16, 128], strides = [1, 1]} : vector<128x128xf32> to vector<16x128xf32>
    %18 = arith.truncf %17 : vector<16x128xf32> to vector<16x128xbf16>
    %c0_9 = arith.constant 0 : index
    %c512 = arith.constant 512 : index
    %19 = vector.load %arg5[%c0_9, %c512] : memref<16x1024xbf16, #tpu.memory_space<vmem>>, vector<16x128xbf16>
    tpu.vector_store %arg5[%c0_9, %c512], %18 {strides = array<i32>} : memref<16x1024xbf16, #tpu.memory_space<vmem>>, vector<16x128xbf16>,
    %20 = vector.extract_strided_slice %4 {offsets = [80, 0], sizes = [16, 128], strides = [1, 1]} : vector<128x128xf32> to vector<16x128xf32>
    %21 = arith.truncf %20 : vector<16x128xf32> to vector<16x128xbf16>
    %c0_10 = arith.constant 0 : index
    %c640 = arith.constant 640 : index
    %22 = vector.load %arg5[%c0_10, %c640] : memref<16x1024xbf16, #tpu.memory_space<vmem>>, vector<16x128xbf16>
    tpu.vector_store %arg5[%c0_10, %c640], %21 {strides = array<i32>} : memref<16x1024xbf16, #tpu.memory_space<vmem>>, vector<16x128xbf16>,
    %23 = vector.extract_strided_slice %4 {offsets = [96, 0], sizes = [16, 128], strides = [1, 1]} : vector<128x128xf32> to vector<16x128xf32>
    %24 = arith.truncf %23 : vector<16x128xf32> to vector<16x128xbf16>
    %c0_11 = arith.constant 0 : index
    %c768 = arith.constant 768 : index
    %25 = vector.load %arg5[%c0_11, %c768] : memref<16x1024xbf16, #tpu.memory_space<vmem>>, vector<16x128xbf16>
    tpu.vector_store %arg5[%c0_11, %c768], %24 {strides = array<i32>} : memref<16x1024xbf16, #tpu.memory_space<vmem>>, vector<16x128xbf16>,
    %26 = vector.extract_strided_slice %4 {offsets = [112, 0], sizes = [16, 128], strides = [1, 1]} : vector<128x128xf32> to vector<16x128xf32>
    %27 = arith.truncf %26 : vector<16x128xf32> to vector<16x128xbf16>
    %c0_12 = arith.constant 0 : index
    %c896 = arith.constant 896 : index
    %28 = vector.load %arg5[%c0_12, %c896] : memref<16x1024xbf16, #tpu.memory_space<vmem>>, vector<16x128xbf16>
    tpu.vector_store %arg5[%c0_12, %c896], %27 {strides = array<i32>} : memref<16x1024xbf16, #tpu.memory_space<vmem>>, vector<16x128xbf16>,
    %c0_13 = arith.constant 0 : index
    %c0_14 = arith.constant 0 : index
    %29 = vector.load %arg2[%c0_13, %c0_14] : memref<8x16xbf16, #tpu.memory_space<vmem>>, vector<8x16xbf16>
    %c0_15 = arith.constant 0 : index
    %c0_16 = arith.constant 0 : index
    %30 = vector.load %arg5[%c0_15, %c0_16] : memref<16x1024xbf16, #tpu.memory_space<vmem>>, vector<16x1024xbf16>
    %cst_17 = arith.constant dense<0.000000e+00> : vector<8x1024xf32>
    %31 = tpu.matmul %29, %30, %cst_17 {dimension_numbers = #tpu.dot_dimension_numbers<[1], [0], [0], [1], [0, 0, 1, 1], [], []>} : vector<8x16xbf16>, vector<16x1024xbf16>, vector<8x1024xf32> -> vector<8x1024xf32>
    %32 = vector.extract_strided_slice %31 {offsets = [0, 0], sizes = [8, 128], strides = [1, 1]} : vector<8x1024xf32> to vector<8x128xf32>
    %c0_18 = arith.constant 0 : index
    %c0_19 = arith.constant 0 : index
    %c0_20 = arith.constant 0 : index
    %33 = vector.load %arg4[%c0_18, %c0_19, %c0_20] : memref<8x8x128xf32, #tpu.memory_space<vmem>>, vector<1x8x128xf32>
    %34 = vector.shape_cast %33 : vector<1x8x128xf32> to vector<8x128xf32>
    %35 = vector.shape_cast %32 : vector<8x128xf32> to vector<1x8x128xf32>
    tpu.vector_store %arg4[%c0_18, %c0_19, %c0_20], %35 {strides = array<i32>} : memref<8x8x128xf32, #tpu.memory_space<vmem>>, vector<1x8x128xf32>,
    %36 = vector.extract_strided_slice %31 {offsets = [0, 128], sizes = [8, 128], strides = [1, 1]} : vector<8x1024xf32> to vector<8x128xf32>
    %c1 = arith.constant 1 : index
    %c0_21 = arith.constant 0 : index
    %c0_22 = arith.constant 0 : index
    %37 = vector.load %arg4[%c1, %c0_21, %c0_22] : memref<8x8x128xf32, #tpu.memory_space<vmem>>, vector<1x8x128xf32>
    %38 = vector.shape_cast %37 : vector<1x8x128xf32> to vector<8x128xf32>
    %39 = vector.shape_cast %36 : vector<8x128xf32> to vector<1x8x128xf32>
    tpu.vector_store %arg4[%c1, %c0_21, %c0_22], %39 {strides = array<i32>} : memref<8x8x128xf32, #tpu.memory_space<vmem>>, vector<1x8x128xf32>,
    %40 = vector.extract_strided_slice %31 {offsets = [0, 256], sizes = [8, 128], strides = [1, 1]} : vector<8x1024xf32> to vector<8x128xf32>
    %c2 = arith.constant 2 : index
    %c0_23 = arith.constant 0 : index
    %c0_24 = arith.constant 0 : index
    %41 = vector.load %arg4[%c2, %c0_23, %c0_24] : memref<8x8x128xf32, #tpu.memory_space<vmem>>, vector<1x8x128xf32>
    %42 = vector.shape_cast %41 : vector<1x8x128xf32> to vector<8x128xf32>
    %43 = vector.shape_cast %40 : vector<8x128xf32> to vector<1x8x128xf32>
    tpu.vector_store %arg4[%c2, %c0_23, %c0_24], %43 {strides = array<i32>} : memref<8x8x128xf32, #tpu.memory_space<vmem>>, vector<1x8x128xf32>,
    %44 = vector.extract_strided_slice %31 {offsets = [0, 384], sizes = [8, 128], strides = [1, 1]} : vector<8x1024xf32> to vector<8x128xf32>
    %c3 = arith.constant 3 : index
    %c0_25 = arith.constant 0 : index
    %c0_26 = arith.constant 0 : index
    %45 = vector.load %arg4[%c3, %c0_25, %c0_26] : memref<8x8x128xf32, #tpu.memory_space<vmem>>, vector<1x8x128xf32>
    %46 = vector.shape_cast %45 : vector<1x8x128xf32> to vector<8x128xf32>
    %47 = vector.shape_cast %44 : vector<8x128xf32> to vector<1x8x128xf32>
    tpu.vector_store %arg4[%c3, %c0_25, %c0_26], %47 {strides = array<i32>} : memref<8x8x128xf32, #tpu.memory_space<vmem>>, vector<1x8x128xf32>,
    %48 = vector.extract_strided_slice %31 {offsets = [0, 512], sizes = [8, 128], strides = [1, 1]} : vector<8x1024xf32> to vector<8x128xf32>
    %c4 = arith.constant 4 : index
    %c0_27 = arith.constant 0 : index
    %c0_28 = arith.constant 0 : index
    %49 = vector.load %arg4[%c4, %c0_27, %c0_28] : memref<8x8x128xf32, #tpu.memory_space<vmem>>, vector<1x8x128xf32>
    %50 = vector.shape_cast %49 : vector<1x8x128xf32> to vector<8x128xf32>
    %51 = vector.shape_cast %48 : vector<8x128xf32> to vector<1x8x128xf32>
    tpu.vector_store %arg4[%c4, %c0_27, %c0_28], %51 {strides = array<i32>} : memref<8x8x128xf32, #tpu.memory_space<vmem>>, vector<1x8x128xf32>,
    %52 = vector.extract_strided_slice %31 {offsets = [0, 640], sizes = [8, 128], strides = [1, 1]} : vector<8x1024xf32> to vector<8x128xf32>
    %c5 = arith.constant 5 : index
    %c0_29 = arith.constant 0 : index
    %c0_30 = arith.constant 0 : index
    %53 = vector.load %arg4[%c5, %c0_29, %c0_30] : memref<8x8x128xf32, #tpu.memory_space<vmem>>, vector<1x8x128xf32>
    %54 = vector.shape_cast %53 : vector<1x8x128xf32> to vector<8x128xf32>
    %55 = vector.shape_cast %52 : vector<8x128xf32> to vector<1x8x128xf32>
    tpu.vector_store %arg4[%c5, %c0_29, %c0_30], %55 {strides = array<i32>} : memref<8x8x128xf32, #tpu.memory_space<vmem>>, vector<1x8x128xf32>,
    %56 = vector.extract_strided_slice %31 {offsets = [0, 768], sizes = [8, 128], strides = [1, 1]} : vector<8x1024xf32> to vector<8x128xf32>
    %c6 = arith.constant 6 : index
    %c0_31 = arith.constant 0 : index
    %c0_32 = arith.constant 0 : index
    %57 = vector.load %arg4[%c6, %c0_31, %c0_32] : memref<8x8x128xf32, #tpu.memory_space<vmem>>, vector<1x8x128xf32>
    %58 = vector.shape_cast %57 : vector<1x8x128xf32> to vector<8x128xf32>
    %59 = vector.shape_cast %56 : vector<8x128xf32> to vector<1x8x128xf32>
    tpu.vector_store %arg4[%c6, %c0_31, %c0_32], %59 {strides = array<i32>} : memref<8x8x128xf32, #tpu.memory_space<vmem>>, vector<1x8x128xf32>,
    %60 = vector.extract_strided_slice %31 {offsets = [0, 896], sizes = [8, 128], strides = [1, 1]} : vector<8x1024xf32> to vector<8x128xf32>
    %c7 = arith.constant 7 : index
    %c0_33 = arith.constant 0 : index
    %c0_34 = arith.constant 0 : index
    %61 = vector.load %arg4[%c7, %c0_33, %c0_34] : memref<8x8x128xf32, #tpu.memory_space<vmem>>, vector<1x8x128xf32>
    %62 = vector.shape_cast %61 : vector<1x8x128xf32> to vector<8x128xf32>
    %63 = vector.shape_cast %60 : vector<8x128xf32> to vector<1x8x128xf32>
    tpu.vector_store %arg4[%c7, %c0_33, %c0_34], %63 {strides = array<i32>} : memref<8x8x128xf32, #tpu.memory_space<vmem>>, vector<1x8x128xf32>,
    return
  }
  func.func @transform_0(%arg0: i32) -> (i32, i32, i32) {
    %c0_i32 = arith.constant 0 : i32
    %c0_i32_0 = arith.constant 0 : i32
    %c0_i32_1 = arith.constant 0 : i32
    return %arg0, %c0_i32, %c0_i32_0 : i32, i32, i32
  }
  func.func @transform_1(%arg0: i32) -> (i32, i32) {
    %c0_i32 = arith.constant 0 : i32
    %c0_i32_0 = arith.constant 0 : i32
    %c0_i32_1 = arith.constant 0 : i32
    return %c0_i32, %c0_i32_0 : i32, i32
  }
  func.func @transform_2(%arg0: i32) -> (i32, i32) {
    %c0_i32 = arith.constant 0 : i32
    %c0_i32_0 = arith.constant 0 : i32
    %c0_i32_1 = arith.constant 0 : i32
    return %c0_i32, %c0_i32_0 : i32, i32
  }
  func.func @transform_3(%arg0: i32) -> (i32, i32, i32) {
    %c0_i32 = arith.constant 0 : i32
    %c0_i32_0 = arith.constant 0 : i32
    %c0_i32_1 = arith.constant 0 : i32
    return %arg0, %c0_i32, %c0_i32_0 : i32, i32, i32
  }
}

</mosaic_0001>

<bundles_post_ra>
// kernel: _augment_forward.1
= control target key start
LH: loop header
LB: loop body
LE: loop exit
PB: predicated region body
PF: predicated region fallthrough
CT: control target
= control target key end

     0   :  { %8 = vsyncpa [#allocation4], 0  ;;  %s575_s0 = inlined_call_operand.hbm [shape: f32[8,16,16], index: 0, kind: input, shape index: {}]   ;;  %s576_s1 = inlined_call_operand.vmem [shape: bf16[8,16], index: 1, kind: input, shape index: {}]   ;;  %s577_s2 = inlined_call_operand.vmem [shape: bf16[16,128], index: 2, kind: input, shape index: {}]   ;;  %s578_s3 = inlined_call_operand.hbm [shape: f32[8,8,128], index: 3, kind: output, shape index: {}]  }
   0x1   :  { %9 = vsyncpa [#allocation5], 0  ;;  %s502_s12 = smov [#allocation3]   ;;  %s454_s16 = scalar_lea.hbm %s575_s0, 2048 }
   0x2   :  { %s15_s13 = sshll.u32 %s502_s12, 4  ;;  %p455_p0 = scmp.ne.s32.totalorder %s575_s0, %s454_s16  ;;  %s16_s13 = int_to_ptr.vmem [resolvable:$true] %s15_s13 }
   0x3   :  { %p458_p1 = scmp.lt.u32.totalorder %s454_s16, %s575_s0 }
   0x5   :  { %p460_p2 = pnand %p458_p1, %p455_p0 }
   0x7   :  { %463 = shalt.err (!%p460_p2)
}
   0x8   :  { %s464_s21 = scalar_lea.vmem %s16_s13, 2048  ;;  %p469_p4 = scmp.lt.s32.totalorder %s16_s13, %s16_s13 }
   0x9   :  { %p465_p3 = scmp.ne.s32.totalorder %s16_s13, %s464_s21  ;;  %p470_p5 = scmp.lt.s32.totalorder %s464_s21, %s464_s21 }
   0xb   :  { %p471_p6 = por %p470_p5, %p469_p4 }
   0xd   :  { %p472_p7 = pnand %p471_p6, %p465_p3 }
   0xf   :  { %475 = shalt.err (!%p472_p7)
}
  0x10   :  { %s503_s22 = smov 128   ;;  %s504_s23 = smov 8  }
  0x11   :  { %21 = dma.hbm_to_vmem [thread:$0]  %s575_s0, 2048, %s16_s13, [#allocation4], %s503_s22, %s503_s22, %s504_s23  }
  0x12   :  { %498 = dma.done.wait [#allocation4], 2048  }
  0x13   :  { %499 = vsyncadd [#allocation4], 4294965248  ;;  %v453_v0 = vld [vmem:[%s577_s2] sm:$0xff]   ;;  %v31_v2 = vld [vmem:[#allocation3 + $0x8] sm:$0xff]  ;;  %vm62_vm0 = vcmask 130048   ;;  %v505_v25 = vmov 0  }
  0x14   :  { %v30_v1 = vld [vmem:[#allocation3] sm:$0xff]  ;;  %v32_v3 = vld [vmem:[#allocation3 + $0x10] sm:$0xff]  ;;  %430 = vmatprep.subr.bf16.mxu0 %v453_v0  ;;  %v33_v5 = vld [vmem:[#allocation3 + $0x18] sm:$0xff]  ;;  %244 = vmatprep.mubr.bf16.mxu1 %v505_v25 }
  0x15   :  { %v46_v4 = vpack.c.bf16 %v31_v2, %v30_v1  ;;  %v34_v6 = vld [vmem:[#allocation3 + $0x20] sm:$0xff]  ;;  %v35_v7 = vld [vmem:[#allocation3 + $0x28] sm:$0xff]  ;;  %431 = vmatpush3.bf16.msra.mxu0 %v453_v0  ;;  %v47_v8 = vpack.c.bf16 %v33_v5, %v32_v3  ;;  %v36_v10 = vld [vmem:[#allocation3 + $0x30] sm:$0xff] }
  0x16   :  { %v48_v9 = vpack.c.bf16 %v35_v7, %v34_v6  ;;  %v37_v11 = vld [vmem:[#allocation3 + $0x38] sm:$0xff]  ;;  %v38_v12 = vld [vmem:[#allocation3 + $0x40] sm:$0xff]  ;;  %v39_v13 = vld [vmem:[#allocation3 + $0x48] sm:$0xff] }
  0x17   :  { %432 = vmatprep.mubr.msk.bf16.mxu0 %vm62_vm0, %v46_v4  ;;  %v49_v14 = vpack.c.bf16 %v37_v11, %v36_v10  ;;  %v50_v15 = vpack.c.bf16 %v39_v13, %v38_v12  ;;  %v40_v16 = vld [vmem:[#allocation3 + $0x50] sm:$0xff]  ;;  %v41_v17 = vld [vmem:[#allocation3 + $0x58] sm:$0xff]  ;;  %v42_v18 = vld [vmem:[#allocation3 + $0x60] sm:$0xff] }
  0x18   :  { %433 = vmatmul.mubr.msk.bf16.vlgmr.msra.gmra.mrb[0].mxu0 %vm62_vm0, %v47_v8  ;;  %v43_v19 = vld [vmem:[#allocation3 + $0x68] sm:$0xff]  ;;  %v51_v20 = vpack.c.bf16 %v41_v17, %v40_v16  ;;  %v44_v22 = vld [vmem:[#allocation3 + $0x70] sm:$0xff]  ;;  %v45_v23 = vld [vmem:[#allocation3 + $0x78] sm:$0xff] }
  0x19   :  { %436 = vmatprep.mubr.msk.bf16.mxu0 %vm62_vm0, %v48_v9  ;;  %v52_v21 = vpack.c.bf16 %v43_v19, %v42_v18  ;;  %v53_v24 = vpack.c.bf16 %v45_v23, %v44_v22  ;;  %v200_v32 = vld [vmem:[%s576_s1] sm:$0xf]  ;;  %s506_s1 = smov [#allocation6]  }
  0x1a   :  { %s396_s28 = sshll.u32 %s506_s1, 4  ;;  %s397_s28 = int_to_ptr.vmem [resolvable:$true] %s396_s28 }
  0x1b   :  { %s476_s29 = scalar_lea.vmem %s397_s28, 1024  ;;  %p481_p9 = scmp.lt.s32.totalorder %s397_s28, %s397_s28 }
  0x1c   :  { %p477_p8 = scmp.ne.s32.totalorder %s397_s28, %s476_s29  ;;  %p482_p10 = scmp.lt.s32.totalorder %s476_s29, %s476_s29 }
  0x1e   :  { %p483_p11 = por %p482_p10, %p481_p9 }
  0x20   :  { %437 = vmatmul.mubr.msk.bf16.gmra.mrb[4].mxu0 %vm62_vm0, %v49_v14  ;;  %p484_p12 = pnand %p483_p11, %p477_p8 }
  0x21   :  { %440 = vmatprep.mubr.msk.bf16.mxu0 %vm62_vm0, %v50_v15 }
  0x28   :  { %441 = vmatmul.mubr.msk.bf16.gmra.mrb[8].mxu0 %vm62_vm0, %v51_v20 }
  0x29   :  { %444 = vmatprep.mubr.msk.bf16.mxu0 %vm62_vm0, %v52_v21 }
  0x30   :  { %445 = vmatmul.mubr.msk.bf16.gmra.mrb[12].mxu0 %vm62_vm0, %v53_v24 }
  0xeb   :  { %v434_v26 = vpop.f32.mrb[0].mxu0 }
  0xec   :  { %v121_v27 = vpop.f32.mrb[1].mxu0 }
  0xed   :  { %v435_v28 = vpop.f32.mrb[2].mxu0 }
  0xee   :  { %v124_v29 = vpop.f32.mrb[3].mxu0  ;;  %v186_v30 = vpack.c.bf16 %v435_v28, %v434_v26 }
  0xef   :  { %v184_v31 = vpack.c.bf16 %v124_v29, %v121_v27 }
  0xf0   :  { %212 = vmatprep.subr.bf16.mxu1 %v186_v30 }
  0xf1   :  { %213 = vmatpush1.bf16.msra.mxu1 %v184_v31 }
  0xf3   :  { %v438_v33 = vpop.f32.mrb[4].mxu0 }
  0xf4   :  { %v137_v34 = vpop.f32.mrb[5].mxu0  ;;  %417 = vmatmul.mubr.msk.bf16.vlgmr.msra.gmra.mrb[0].mxu1 %vm62_vm0, %v200_v32 }
  0xf5   :  { %v439_v35 = vpop.f32.mrb[6].mxu0  ;;  %285 = vmatprep.mubr.bf16.mxu1 %v505_v25 }
  0xf6   :  { %v190_v36 = vpack.c.bf16 %v439_v35, %v438_v33  ;;  %v140_v37 = vpop.f32.mrb[7].mxu0 }
  0xf7   :  { %v188_v38 = vpack.c.bf16 %v140_v37, %v137_v34 }
  0xf8   :  { %253 = vmatprep.subr.bf16.mxu1 %v190_v36 }
  0xf9   :  { %254 = vmatpush1.bf16.msra.mxu1 %v188_v38 }
  0xfb   :  { %v442_v39 = vpop.f32.mrb[8].mxu0 }
  0xfc   :  { %v153_v40 = vpop.f32.mrb[9].mxu0  ;;  %418 = vmatmul.mubr.msk.bf16.vlgmr.msra.gmra.mrb[4].mxu1 %vm62_vm0, %v200_v32 }
  0xfd   :  { %v443_v41 = vpop.f32.mrb[10].mxu0  ;;  %326 = vmatprep.mubr.bf16.mxu1 %v505_v25 }
  0xfe   :  { %v194_v42 = vpack.c.bf16 %v443_v41, %v442_v39  ;;  %v156_v43 = vpop.f32.mrb[11].mxu0 }
  0xff   :  { %v192_v44 = vpack.c.bf16 %v156_v43, %v153_v40 }
 0x100   :  { %294 = vmatprep.subr.bf16.mxu1 %v194_v42 }
 0x101   :  { %295 = vmatpush1.bf16.msra.mxu1 %v192_v44 }
 0x103   :  { %v446_v45 = vpop.f32.mrb[12].mxu0 }
 0x104   :  { %v169_v46 = vpop.f32.mrb[13].mxu0  ;;  %419 = vmatmul.mubr.msk.bf16.vlgmr.msra.gmra.mrb[8].mxu1 %vm62_vm0, %v200_v32 }
 0x105   :  { %v447_v47 = vpop.f32.mrb[14].mxu0  ;;  %367 = vmatprep.mubr.bf16.mxu1 %v505_v25 }
 0x106   :  { %v198_v48 = vpack.c.bf16 %v447_v47, %v446_v45  ;;  %v172_v49 = vpop.f32.mrb[15].mxu0 }
 0x107   :  { %v196_v50 = vpack.c.bf16 %v172_v49, %v169_v46 }
 0x108   :  { %335 = vmatprep.subr.bf16.mxu1 %v198_v48 }
 0x109   :  { %336 = vmatpush1.bf16.msra.mxu1 %v196_v50 }
 0x10c   :  { %420 = vmatmul.mubr.msk.bf16.vlgmr.msra.gmra.mrb[12].mxu1 %vm62_vm0, %v200_v32 }
 0x1c7   :  { %v246_v51 = vpop.f32.mrb[0].mxu1 }
 0x1c8   :  { %376 = vst [vmem:[#allocation6] sm:$0xff] %v246_v51  ;;  %v248_v52 = vpop.f32.mrb[1].mxu1 }
 0x1c9   :  { %378 = vst [vmem:[#allocation6 + $0x8] sm:$0xff] %v248_v52  ;;  %v250_v53 = vpop.f32.mrb[2].mxu1 }
 0x1ca   :  { %v251_v54 = vpop.f32.mrb[3].mxu1 }
 0x1cf   :  { %v287_v55 = vpop.f32.mrb[4].mxu1 }
 0x1d0   :  { %380 = vst [vmem:[#allocation6 + $0x10] sm:$0xff] %v287_v55  ;;  %v289_v56 = vpop.f32.mrb[5].mxu1 }
 0x1d1   :  { %382 = vst [vmem:[#allocation6 + $0x18] sm:$0xff] %v289_v56  ;;  %v291_v57 = vpop.f32.mrb[6].mxu1 }
 0x1d2   :  { %v292_v58 = vpop.f32.mrb[7].mxu1 }
 0x1d7   :  { %v328_v59 = vpop.f32.mrb[8].mxu1 }
 0x1d8   :  { %384 = vst [vmem:[#allocation6 + $0x20] sm:$0xff] %v328_v59  ;;  %v330_v60 = vpop.f32.mrb[9].mxu1 }
 0x1d9   :  { %386 = vst [vmem:[#allocation6 + $0x28] sm:$0xff] %v330_v60  ;;  %v332_v61 = vpop.f32.mrb[10].mxu1 }
 0x1da   :  { %v333_v62 = vpop.f32.mrb[11].mxu1 }
 0x1df   :  { %v369_v63 = vpop.f32.mrb[12].mxu1 }
 0x1e0   :  { %388 = vst [vmem:[#allocation6 + $0x30] sm:$0xff] %v369_v63  ;;  %v371_v0 = vpop.f32.mrb[13].mxu1 }
 0x1e1   :  { %390 = vst [vmem:[#allocation6 + $0x38] sm:$0xff] %v371_v0  ;;  %v373_v1 = vpop.f32.mrb[14].mxu1 }
 0x1e2   :  { %v374_v2 = vpop.f32.mrb[15].mxu1 }
 0x1e3   :  { %487 = shalt.err (!%p484_p12)
}
 0x1e4   :  { %s488_s5 = scalar_lea.hbm %s578_s3, 1024 }
 0x1e5   :  { %p489_p13 = scmp.ne.s32.totalorder %s578_s3, %s488_s5  ;;  %p492_p0 = scmp.lt.u32.totalorder %s488_s5, %s578_s3 }
 0x1e7   :  { %p494_p1 = pnand %p492_p0, %p489_p13 }
 0x1e9   :  { %497 = shalt.err (!%p494_p1)
}
 0x1ea   :  { %402 = dma.vmem_to_hbm [thread:$0]  %s397_s28, 1024, %s578_s3, [#allocation5], %s503_s22, %s503_s22, %s504_s23  }
 0x1eb   :  { %500 = dma.done.wait [#allocation5], 1024  }
 0x1ec   :  { %501 = vsyncadd [#allocation5], 4294966272 }
 0x1ed   :  { %406 = vsyncpa [#allocation4], 1 }
 0x1ee   :  { %407 = vsyncpa [#allocation5], 1 }

</bundles_post_ra>
